<compile_context>
chip_gen: v7x
topology: tpu7x:2x2x1
jax: 0.10.0
libtpu: 0.0.40
codegen_flags: <defaults>
</compile_context>

<pallas_src>
import functools

import numpy as np
import jax
import jax.numpy as jnp
from jax.experimental import pallas as pl
from jax.experimental.pallas import tpu as pltpu


def _cell_size_kernel(params_ref, x_ref, o_ref, *, n, unit_alpha):
    """params_ref: SMEM flat f32 [A(n) | alpha(n) | B(n*n, row-major) | C(1)].
    x_ref: (2n, TILE_B) VMEM block (features on sublanes, batch on lanes).
    o_ref: (1, TILE_B) VMEM block (lane-dense output)."""
    x = x_ref[...]                                    # (2n, TILE_B)

    # organelle rows, one (1, TILE_B) vector per feature.
    org = []
    for i in range(n):
        avg_i = x[i:i + 1, :]
        num_i = x[n + i:n + i + 1, :]
        if unit_alpha:
            org.append(num_i * avg_i)                 # pow(avg, 1) == avg
        else:
            org.append(num_i * jnp.power(avg_i, params_ref[n + i]))

    # bias C + linear term sum_i A_i * org_i   (scalar * vector VPU FMAs)
    acc = jnp.zeros(o_ref.shape, jnp.float32) + params_ref[2 * n + n * n]
    for i in range(n):
        acc = acc + params_ref[i] * org[i]

    # quadratic term sum_ij B_ij * org_i * org_j, fully unrolled; no MXU.
    boff = 2 * n
    for i in range(n):
        t = params_ref[boff + i * n] * org[0]
        for j in range(1, n):
            t = t + params_ref[boff + i * n + j] * org[j]
        acc = acc + org[i] * t

    o_ref[...] = acc


def cell_size_predictor(x, A, Bmat, C, alpha, *, tile_b=512, unit_alpha=None):
    """x: (batch, 2n); A, alpha: (n,); Bmat: (n, n); C: (1,). Returns (batch,)."""
    batch = x.shape[0]
    n = A.shape[0]
    assert x.shape[1] == 2 * n

    if unit_alpha is None:
        # Trace-time fast path when alpha is a concrete all-ones array.
        try:
            unit_alpha = bool(np.all(np.asarray(alpha) == 1.0))
        except Exception:
            unit_alpha = False  # traced alpha -> keep the general pow path

    # Batch on the lane axis: transpose once and pad to a lane-aligned tile.
    tile_b = max(128, min(tile_b, pl.cdiv(batch, 128) * 128))
    batch_p = pl.cdiv(batch, tile_b) * tile_b
    xt = jnp.transpose(x.astype(jnp.float32))                  # (2n, batch)
    if batch_p != batch:
        # pad value 1.0 keeps pow() finite in the discarded lanes
        xt = jnp.pad(xt, ((0, 0), (0, batch_p - batch)), constant_values=1.0)

    # Pack every (tiny) parameter into one SMEM-resident flat array.
    params = jnp.concatenate(
        [A.reshape(-1), alpha.reshape(-1), Bmat.reshape(-1), C.reshape(-1)]
    ).astype(jnp.float32)                                       # (n*n + 2n + 1,)

    kernel = functools.partial(_cell_size_kernel, n=n, unit_alpha=unit_alpha)
    out = pl.pallas_call(
        kernel,
        out_shape=jax.ShapeDtypeStruct((1, batch_p), jnp.float32),
        grid=(batch_p // tile_b,),
        in_specs=[
            pl.BlockSpec(memory_space=pltpu.MemorySpace.SMEM),   # packed params
            pl.BlockSpec((2 * n, tile_b), lambda b: (0, b)),     # x tile
        ],
        out_specs=pl.BlockSpec((1, tile_b), lambda b: (0, b)),   # lane-dense out
        compiler_params=pltpu.CompilerParams(
            dimension_semantics=("parallel",)),
    )(params, xt)
    return out[0, :batch]


if __name__ == "__main__":
    n_input = 4
    batch = 8

    key = jax.random.PRNGKey(0)
    k_x, k_a, k_b, k_al = jax.random.split(key, 4)

    # Positive inputs so average ** alpha is well defined for non-integer alpha.
    x = jax.random.uniform(k_x, (batch, 2 * n_input), jnp.float32,
                           minval=0.1, maxval=2.0)

    A = jax.random.normal(k_a, (n_input,), jnp.float32)
    Bmat = jax.random.normal(k_b, (n_input, n_input), jnp.float32)
    C = jnp.zeros((1,), jnp.float32)
    alpha_ones = jnp.ones((n_input,), jnp.float32)                       # init value
    alpha_rand = jax.random.uniform(k_al, (n_input,), jnp.float32,
                                    minval=0.5, maxval=1.5)              # pow path

    def ref_fn(alpha):
        avg = x[:, :n_input]
        num = x[:, -n_input:]
        org = num * jnp.power(avg, alpha)
        return org @ A + jnp.einsum("bi,ij,bj->b", org, Bmat, org) + C[0]

    # Fast path (alpha statically all ones -> no transcendental work).
    out1 = jax.block_until_ready(cell_size_predictor(x, A, Bmat, C, alpha_ones))
    assert out1.shape == (batch,)
    assert jnp.allclose(out1, ref_fn(alpha_ones), rtol=1e-4, atol=1e-4)

    # General path (non-unit alpha -> pow via EUP).
    out2 = jax.block_until_ready(cell_size_predictor(x, A, Bmat, C, alpha_rand))
    assert jnp.allclose(out2, ref_fn(alpha_rand), rtol=1e-4, atol=1e-4)

    print("KERNEL_OK")
</pallas_src>

<mosaic_0001>
module attributes {stable_mosaic.version = 11 : i64} {
  func.func @_cell_size_kernel(%arg0: i32, %arg1: memref<25xf32, #tpu.memory_space<smem>>, %arg2: memref<8x128xf32, #tpu.memory_space<vmem>>, %arg3: memref<1x128xf32, #tpu.memory_space<vmem>>) attributes {dimension_semantics = [#tpu.dimension_semantics<parallel>], iteration_bounds = array<i64: 1>, scalar_prefetch = 0 : i64, scratch_operands = 0 : i64, tpu.core_type = #tpu.core_type<tc>, window_params = [{transform_indices = @transform_0, window_bounds = array<i64: 25>}, {transform_indices = @transform_1, window_bounds = array<i64: 8, 128>}, {transform_indices = @transform_2, window_bounds = array<i64: 1, 128>}]} {
    %c0 = arith.constant 0 : index
    %c0_0 = arith.constant 0 : index
    %0 = vector.load %arg2[%c0, %c0_0] : memref<8x128xf32, #tpu.memory_space<vmem>>, vector<8x128xf32>
    %1 = vector.extract_strided_slice %0 {offsets = [0, 0], sizes = [1, 128], strides = [1, 1]} : vector<8x128xf32> to vector<1x128xf32>
    %2 = vector.extract_strided_slice %0 {offsets = [4, 0], sizes = [1, 128], strides = [1, 1]} : vector<8x128xf32> to vector<1x128xf32>
    %3 = arith.mulf %2, %1 : vector<1x128xf32>
    %4 = vector.extract_strided_slice %0 {offsets = [1, 0], sizes = [1, 128], strides = [1, 1]} : vector<8x128xf32> to vector<1x128xf32>
    %5 = vector.extract_strided_slice %0 {offsets = [5, 0], sizes = [1, 128], strides = [1, 1]} : vector<8x128xf32> to vector<1x128xf32>
    %6 = arith.mulf %5, %4 : vector<1x128xf32>
    %7 = vector.extract_strided_slice %0 {offsets = [2, 0], sizes = [1, 128], strides = [1, 1]} : vector<8x128xf32> to vector<1x128xf32>
    %8 = vector.extract_strided_slice %0 {offsets = [6, 0], sizes = [1, 128], strides = [1, 1]} : vector<8x128xf32> to vector<1x128xf32>
    %9 = arith.mulf %8, %7 : vector<1x128xf32>
    %10 = vector.extract_strided_slice %0 {offsets = [3, 0], sizes = [1, 128], strides = [1, 1]} : vector<8x128xf32> to vector<1x128xf32>
    %11 = vector.extract_strided_slice %0 {offsets = [7, 0], sizes = [1, 128], strides = [1, 1]} : vector<8x128xf32> to vector<1x128xf32>
    %12 = arith.mulf %11, %10 : vector<1x128xf32>
    %cst = arith.constant 0.000000e+00 : f32
    %13 = vector.broadcast %cst : f32 to vector<1x128xf32>
    %c24 = arith.constant 24 : index
    %14 = memref.load %arg1[%c24] : memref<25xf32, #tpu.memory_space<smem>>
    %15 = vector.broadcast %14 : f32 to vector<1x128xf32>
    %16 = arith.addf %13, %15 : vector<1x128xf32>
    %c0_1 = arith.constant 0 : index
    %17 = memref.load %arg1[%c0_1] : memref<25xf32, #tpu.memory_space<smem>>
    %18 = vector.broadcast %17 : f32 to vector<1x128xf32>
    %19 = arith.mulf %18, %3 : vector<1x128xf32>
    %20 = arith.addf %16, %19 : vector<1x128xf32>
    %c1 = arith.constant 1 : index
    %21 = memref.load %arg1[%c1] : memref<25xf32, #tpu.memory_space<smem>>
    %22 = vector.broadcast %21 : f32 to vector<1x128xf32>
    %23 = arith.mulf %22, %6 : vector<1x128xf32>
    %24 = arith.addf %20, %23 : vector<1x128xf32>
    %c2 = arith.constant 2 : index
    %25 = memref.load %arg1[%c2] : memref<25xf32, #tpu.memory_space<smem>>
    %26 = vector.broadcast %25 : f32 to vector<1x128xf32>
    %27 = arith.mulf %26, %9 : vector<1x128xf32>
    %28 = arith.addf %24, %27 : vector<1x128xf32>
    %c3 = arith.constant 3 : index
    %29 = memref.load %arg1[%c3] : memref<25xf32, #tpu.memory_space<smem>>
    %30 = vector.broadcast %29 : f32 to vector<1x128xf32>
    %31 = arith.mulf %30, %12 : vector<1x128xf32>
    %32 = arith.addf %28, %31 : vector<1x128xf32>
    %c8 = arith.constant 8 : index
    %33 = memref.load %arg1[%c8] : memref<25xf32, #tpu.memory_space<smem>>
    %34 = vector.broadcast %33 : f32 to vector<1x128xf32>
    %35 = arith.mulf %34, %3 : vector<1x128xf32>
    %c9 = arith.constant 9 : index
    %36 = memref.load %arg1[%c9] : memref<25xf32, #tpu.memory_space<smem>>
    %37 = vector.broadcast %36 : f32 to vector<1x128xf32>
    %38 = arith.mulf %37, %6 : vector<1x128xf32>
    %39 = arith.addf %35, %38 : vector<1x128xf32>
    %c10 = arith.constant 10 : index
    %40 = memref.load %arg1[%c10] : memref<25xf32, #tpu.memory_space<smem>>
    %41 = vector.broadcast %40 : f32 to vector<1x128xf32>
    %42 = arith.mulf %41, %9 : vector<1x128xf32>
    %43 = arith.addf %39, %42 : vector<1x128xf32>
    %c11 = arith.constant 11 : index
    %44 = memref.load %arg1[%c11] : memref<25xf32, #tpu.memory_space<smem>>
    %45 = vector.broadcast %44 : f32 to vector<1x128xf32>
    %46 = arith.mulf %45, %12 : vector<1x128xf32>
    %47 = arith.addf %43, %46 : vector<1x128xf32>
    %48 = arith.mulf %3, %47 : vector<1x128xf32>
    %49 = arith.addf %32, %48 : vector<1x128xf32>
    %c12 = arith.constant 12 : index
    %50 = memref.load %arg1[%c12] : memref<25xf32, #tpu.memory_space<smem>>
    %51 = vector.broadcast %50 : f32 to vector<1x128xf32>
    %52 = arith.mulf %51, %3 : vector<1x128xf32>
    %c13 = arith.constant 13 : index
    %53 = memref.load %arg1[%c13] : memref<25xf32, #tpu.memory_space<smem>>
    %54 = vector.broadcast %53 : f32 to vector<1x128xf32>
    %55 = arith.mulf %54, %6 : vector<1x128xf32>
    %56 = arith.addf %52, %55 : vector<1x128xf32>
    %c14 = arith.constant 14 : index
    %57 = memref.load %arg1[%c14] : memref<25xf32, #tpu.memory_space<smem>>
    %58 = vector.broadcast %57 : f32 to vector<1x128xf32>
    %59 = arith.mulf %58, %9 : vector<1x128xf32>
    %60 = arith.addf %56, %59 : vector<1x128xf32>
    %c15 = arith.constant 15 : index
    %61 = memref.load %arg1[%c15] : memref<25xf32, #tpu.memory_space<smem>>
    %62 = vector.broadcast %61 : f32 to vector<1x128xf32>
    %63 = arith.mulf %62, %12 : vector<1x128xf32>
    %64 = arith.addf %60, %63 : vector<1x128xf32>
    %65 = arith.mulf %6, %64 : vector<1x128xf32>
    %66 = arith.addf %49, %65 : vector<1x128xf32>
    %c16 = arith.constant 16 : index
    %67 = memref.load %arg1[%c16] : memref<25xf32, #tpu.memory_space<smem>>
    %68 = vector.broadcast %67 : f32 to vector<1x128xf32>
    %69 = arith.mulf %68, %3 : vector<1x128xf32>
    %c17 = arith.constant 17 : index
    %70 = memref.load %arg1[%c17] : memref<25xf32, #tpu.memory_space<smem>>
    %71 = vector.broadcast %70 : f32 to vector<1x128xf32>
    %72 = arith.mulf %71, %6 : vector<1x128xf32>
    %73 = arith.addf %69, %72 : vector<1x128xf32>
    %c18 = arith.constant 18 : index
    %74 = memref.load %arg1[%c18] : memref<25xf32, #tpu.memory_space<smem>>
    %75 = vector.broadcast %74 : f32 to vector<1x128xf32>
    %76 = arith.mulf %75, %9 : vector<1x128xf32>
    %77 = arith.addf %73, %76 : vector<1x128xf32>
    %c19 = arith.constant 19 : index
    %78 = memref.load %arg1[%c19] : memref<25xf32, #tpu.memory_space<smem>>
    %79 = vector.broadcast %78 : f32 to vector<1x128xf32>
    %80 = arith.mulf %79, %12 : vector<1x128xf32>
    %81 = arith.addf %77, %80 : vector<1x128xf32>
    %82 = arith.mulf %9, %81 : vector<1x128xf32>
    %83 = arith.addf %66, %82 : vector<1x128xf32>
    %c20 = arith.constant 20 : index
    %84 = memref.load %arg1[%c20] : memref<25xf32, #tpu.memory_space<smem>>
    %85 = vector.broadcast %84 : f32 to vector<1x128xf32>
    %86 = arith.mulf %85, %3 : vector<1x128xf32>
    %c21 = arith.constant 21 : index
    %87 = memref.load %arg1[%c21] : memref<25xf32, #tpu.memory_space<smem>>
    %88 = vector.broadcast %87 : f32 to vector<1x128xf32>
    %89 = arith.mulf %88, %6 : vector<1x128xf32>
    %90 = arith.addf %86, %89 : vector<1x128xf32>
    %c22 = arith.constant 22 : index
    %91 = memref.load %arg1[%c22] : memref<25xf32, #tpu.memory_space<smem>>
    %92 = vector.broadcast %91 : f32 to vector<1x128xf32>
    %93 = arith.mulf %92, %9 : vector<1x128xf32>
    %94 = arith.addf %90, %93 : vector<1x128xf32>
    %c23 = arith.constant 23 : index
    %95 = memref.load %arg1[%c23] : memref<25xf32, #tpu.memory_space<smem>>
    %96 = vector.broadcast %95 : f32 to vector<1x128xf32>
    %97 = arith.mulf %96, %12 : vector<1x128xf32>
    %98 = arith.addf %94, %97 : vector<1x128xf32>
    %99 = arith.mulf %12, %98 : vector<1x128xf32>
    %100 = arith.addf %83, %99 : vector<1x128xf32>
    %c0_2 = arith.constant 0 : index
    %c0_3 = arith.constant 0 : index
    %101 = vector.load %arg3[%c0_2, %c0_3] : memref<1x128xf32, #tpu.memory_space<vmem>>, vector<1x128xf32>
    tpu.vector_store %arg3[%c0_2, %c0_3], %100 {strides = array<i32>} : memref<1x128xf32, #tpu.memory_space<vmem>>, vector<1x128xf32>,
    return
  }
  func.func @transform_0(%arg0: i32) -> i32 {
    %c0_i32 = arith.constant 0 : i32
    %c0_i32_0 = arith.constant 0 : i32
    return %c0_i32 : i32
  }
  func.func @transform_1(%arg0: i32) -> (i32, i32) {
    %c0_i32 = arith.constant 0 : i32
    %c0_i32_0 = arith.constant 0 : i32
    return %c0_i32, %arg0 : i32, i32
  }
  func.func @transform_2(%arg0: i32) -> (i32, i32) {
    %c0_i32 = arith.constant 0 : i32
    %c0_i32_0 = arith.constant 0 : i32
    return %c0_i32, %arg0 : i32, i32
  }
}

</mosaic_0001>

<bundles_post_ra>
// kernel: tpu_custom_call.1
= control target key start
LH: loop header
LB: loop body
LE: loop exit
PB: predicated region body
PF: predicated region fallthrough
CT: control target
= control target key end

     0   :  { %7 = vsyncpa [#allocation5], 0  ;;  %s409_s0 = inlined_call_operand.hbm [shape: f32[25], index: 0, kind: input, shape index: {}]   ;;  %s410_s1 = inlined_call_operand.hbm [shape: f32[8,128], index: 1, kind: input, shape index: {}]   ;;  %s411_s2 = inlined_call_operand.hbm [shape: f32[1,128], index: 2, kind: output, shape index: {}]  }
   0x1   :  { %8 = vsyncpa [#allocation3], 0 }
   0x2   :  { %9 = vsyncpa [#allocation4], 0  ;;  %s230_s11 = scalar_lea.hbm %s409_s0, 16 }
   0x3   :  { %p231_p0 = scmp.ne.s32.totalorder %s409_s0, %s230_s11  ;;  %p234_p1 = scmp.lt.u32.totalorder %s230_s11, %s409_s0 }
   0x5   :  { %p236_p2 = pnand %p234_p1, %p231_p0 }
   0x7   :  { %239 = shalt.err (!%p236_p2)
}
   0x8   :  { %s290_s16 = smov [#allocation2]   ;;  %s291_s19 = smov [#allocation6]  }
   0x9   :  { %17 = dma.hbm_to_smem %s409_s0, 16, %s290_s16, [#allocation5]  }
   0xa   :  { %s24_s20 = sshll.u32 %s291_s19, 4  ;;  %s240_s23 = scalar_lea.hbm %s410_s1, 128  ;;  %s25_s20 = int_to_ptr.vmem [resolvable:$true] %s24_s20 }
   0xb   :  { %p241_p3 = scmp.ne.s32.totalorder %s410_s1, %s240_s23  ;;  %p244_p4 = scmp.lt.u32.totalorder %s240_s23, %s410_s1 }
   0xd   :  { %p246_p5 = pnand %p244_p4, %p241_p3 }
   0xf   :  { %249 = shalt.err (!%p246_p5)
}
  0x10   :  { %s250_s28 = scalar_lea.vmem %s25_s20, 128  ;;  %p255_p7 = scmp.lt.s32.totalorder %s25_s20, %s25_s20 }
  0x11   :  { %p251_p6 = scmp.ne.s32.totalorder %s25_s20, %s250_s28  ;;  %p256_p8 = scmp.lt.s32.totalorder %s250_s28, %s250_s28 }
  0x13   :  { %p257_p9 = por %p256_p8, %p255_p7 }
  0x15   :  { %p258_p10 = pnand %p257_p9, %p251_p6 }
  0x17   :  { %261 = shalt.err (!%p258_p10)
}
  0x18   :  { %27 = dma.hbm_to_vmem [thread:$0]  %s410_s1, 128, %s25_s20, [#allocation3]  }
  0x19   :  { %284 = dma.done.wait [#allocation5], 16  }
  0x1a   :  { %285 = vsyncadd [#allocation5], 4294967280 }
  0x1b   :  { %286 = dma.done.wait [#allocation3], 128  }
  0x1c   :  { %287 = vsyncadd [#allocation3], 4294967168 }
  0x1d   :  { %34 = sfence }
  0x1e   :  { %v35_v0 = vld [vmem:[#allocation6] sm:$0xff]  ;;  %s207_s30 = sld [smem:[#allocation2 + $0x18]]  ;;  %s208_s4 = sld [smem:[#allocation2 + $0x1]] }
  0x1f   :  { %s43_s3 = sld [smem:[#allocation2]]  ;;  %v37_v1 = vrot.slane %v35_v0, 4  ;;  %s209_s5 = sld [smem:[#allocation2 + $0x2]] }
  0x20   :  { %s210_s6 = sld [smem:[#allocation2 + $0x3]]  ;;  %s211_s7 = sld [smem:[#allocation2 + $0x8]] }
  0x21   :  { %s212_s8 = sld [smem:[#allocation2 + $0x9]]  ;;  %s213_s9 = sld [smem:[#allocation2 + $0xa]]  ;;  %v336_v2 = vmul.f32 %v37_v1, %v35_v0 }
  0x22   :  { %s332_s10 = sld [smem:[#allocation2 + $0xb]]  ;;  %s334_s11 = sld [smem:[#allocation2 + $0xc]] }
  0x23   :  { %s338_s1 = sld [smem:[#allocation2 + $0xd]]  ;;  %s340_s12 = sld [smem:[#allocation2 + $0xe]] }
  0x24   :  { %v41_v3 = vstv %s207_s30  ;;  %s342_s13 = sld [smem:[#allocation2 + $0xf]]  ;;  %v48_v6 = vstv %s208_s4  ;;  %s345_s14 = sld [smem:[#allocation2 + $0x10]] }
  0x25   :  { %v44_v4 = vstv %s43_s3  ;;  %v55_v7 = vstv %s209_s5  ;;  %s347_s15 = sld [smem:[#allocation2 + $0x11]]  ;;  %v49_v8 = vmul.f32 %v48_v6, %v336_v2  ;;  %s352_s16 = sld [smem:[#allocation2 + $0x12]] }
  0x26   :  { %v45_v5 = vmul.f32 %v44_v4, %v336_v2  ;;  %v56_v9 = vmul.f32 %v55_v7, %v336_v2  ;;  %v62_v10 = vstv %s210_s6  ;;  %v69_v11 = vstv %s211_s7  ;;  %s356_s17 = sld [smem:[#allocation2 + $0x13]]  ;;  %s361_s18 = sld [smem:[#allocation2 + $0x14]] }
  0x27   :  { %v63_v13 = vmul.f32 %v62_v10, %v336_v2  ;;  %v72_v14 = vstv %s212_s8  ;;  %v51_v15 = vrot.slane %v49_v8, 1  ;;  %v70_v16 = vmul.f32 %v69_v11, %v336_v2  ;;  %s363_s19 = sld [smem:[#allocation2 + $0x15]]  ;;  %s369_s20 = sld [smem:[#allocation2 + $0x16]] }
  0x28   :  { %v46_v12 = vadd.f32 %v45_v5, %v41_v3  ;;  %v73_v17 = vmul.f32 %v72_v14, %v336_v2  ;;  %v79_v18 = vstv %s213_s9  ;;  %v58_v19 = vrot.slane %v56_v9, 2  ;;  %s373_s21 = sld [smem:[#allocation2 + $0x17]]  ;;  %s292_s22 = smov [#allocation7]  }
  0x29   :  { %v80_v20 = vmul.f32 %v79_v18, %v336_v2  ;;  %v86_v21 = vstv %s332_s10  ;;  %v95_v22 = vstv %s334_s11  ;;  %v65_v24 = vrot.slane %v63_v13, 3  ;;  %s197_s23 = sshll.u32 %s292_s22, 4  ;;  %s198_s23 = int_to_ptr.vmem [resolvable:$true] %s197_s23 }
  0x2a   :  { %v53_v23 = vadd.f32 %v51_v15, %v46_v12  ;;  %v75_v25 = vrot.slane %v73_v17, 1  ;;  %v87_v26 = vmul.f32 %v86_v21, %v336_v2  ;;  %v98_v28 = vstv %s338_s1  ;;  %s262_s24 = scalar_lea.vmem %s198_s23, 16  ;;  %s266_s25 = scalar_lea.vmem %s198_s23, 32 }
  0x2b   :  { %v82_v27 = vrot.slane %v80_v20, 2  ;;  %v105_v29 = vstv %s340_s12  ;;  %v112_v30 = vstv %s342_s13  ;;  %v96_v33 = vmul.f32 %v95_v22, %v336_v2  ;;  %p263_p11 = scmp.ne.s32.totalorder %s198_s23, %s262_s24  ;;  %p267_p12 = scmp.lt.s32.totalorder %s198_s23, %s198_s23 }
  0x2c   :  { %v77_v31 = vadd.f32 %v75_v25, %v70_v16  ;;  %v89_v32 = vrot.slane %v87_v26, 3  ;;  %v99_v34 = vmul.f32 %v98_v28, %v336_v2  ;;  %v106_v35 = vmul.f32 %v105_v29, %v336_v2  ;;  %p268_p13 = scmp.lt.s32.totalorder %s266_s25, %s262_s24 }
  0x2d   :  { %v113_v36 = vmul.f32 %v112_v30, %v336_v2  ;;  %v127_v37 = vstv %s345_s14  ;;  %v130_v38 = vstv %s347_s15  ;;  %v60_v39 = vadd.f32 %v58_v19, %v53_v23 }
  0x2e   :  { %v84_v40 = vadd.f32 %v82_v27, %v77_v31  ;;  %v101_v41 = vrot.slane %v99_v34, 1  ;;  %v128_v42 = vmul.f32 %v127_v37, %v336_v2  ;;  %v108_v43 = vrot.slane %v106_v35, 2  ;;  %p269_p0 = por %p268_p13, %p267_p12 }
  0x2f   :  { %v115_v44 = vrot.slane %v113_v36, 3  ;;  %v131_v45 = vmul.f32 %v130_v38, %v336_v2  ;;  %v137_v46 = vstv %s352_s16  ;;  %v144_v50 = vstv %s356_s17 }
  0x30   :  { %v91_v47 = vadd.f32 %v89_v32, %v84_v40  ;;  %v103_v48 = vadd.f32 %v101_v41, %v96_v33  ;;  %v138_v49 = vmul.f32 %v137_v46, %v336_v2  ;;  %v145_v52 = vmul.f32 %v144_v50, %v336_v2  ;;  %p270_p1 = pnand %p269_p0, %p263_p11 }
  0x31   :  { %v133_v51 = vrot.slane %v131_v45, 1  ;;  %v159_v53 = vstv %s361_s18  ;;  %v162_v54 = vstv %s363_s19  ;;  %v67_v55 = vadd.f32 %v65_v24, %v60_v39 }
  0x32   :  { %v110_v56 = vadd.f32 %v108_v43, %v103_v48  ;;  %v140_v57 = vrot.slane %v138_v49, 2  ;;  %v160_v58 = vmul.f32 %v159_v53, %v336_v2  ;;  %v147_v60 = vrot.slane %v145_v52, 3 }
  0x33   :  { %v135_v59 = vadd.f32 %v133_v51, %v128_v42  ;;  %v163_v61 = vmul.f32 %v162_v54, %v336_v2  ;;  %v169_v62 = vstv %s369_s20  ;;  %v92_v63 = vmul.f32 %v91_v47, %v336_v2 }
  0x34   :  { %v117_v0 = vadd.f32 %v115_v44, %v110_v56  ;;  %v170_v1 = vmul.f32 %v169_v62, %v336_v2  ;;  %v176_v3 = vstv %s373_s21 }
  0x35   :  { %v142_v4 = vadd.f32 %v140_v57, %v135_v59  ;;  %v165_v5 = vrot.slane %v163_v61, 1  ;;  %v177_v6 = vmul.f32 %v176_v3, %v336_v2  ;;  %v93_v12 = vadd.f32 %v92_v63, %v67_v55 }
  0x36   :  { %v119_v7 = vrot.slane %v117_v0, 7  ;;  %v172_v8 = vrot.slane %v170_v1, 2 }
  0x37   :  { %v149_v9 = vadd.f32 %v147_v60, %v142_v4  ;;  %v167_v10 = vadd.f32 %v165_v5, %v160_v58  ;;  %v179_v11 = vrot.slane %v177_v6, 3 }
  0x38   :  { %v121_v13 = vmul.f32 %v119_v7, %v336_v2 }
  0x39   :  { %v151_v14 = vrot.slane %v149_v9, 6  ;;  %v174_v15 = vadd.f32 %v172_v8, %v167_v10 }
  0x3a   :  { %v123_v16 = vrot.slane %v121_v13, 1 }
  0x3b   :  { %v153_v17 = vmul.f32 %v151_v14, %v336_v2  ;;  %v181_v18 = vadd.f32 %v179_v11, %v174_v15 }
  0x3c   :  { %v125_v19 = vadd.f32 %v123_v16, %v93_v12 }
  0x3d   :  { %v155_v20 = vrot.slane %v153_v17, 2  ;;  %v183_v21 = vrot.slane %v181_v18, 5 }
  0x3f   :  { %v157_v22 = vadd.f32 %v155_v20, %v125_v19  ;;  %v185_v23 = vmul.f32 %v183_v21, %v336_v2 }
  0x41   :  { %v187_v24 = vrot.slane %v185_v23, 3 }
  0x43   :  { %v189_v25 = vadd.f32 %v187_v24, %v157_v22 }
  0x45   :  { %190 = vst [vmem:[#allocation7 - $0x4] sm:$0x10] %v189_v25 }
  0x46   :  { %273 = shalt.err (!%p270_p1)
}
  0x47   :  { %s274_s28 = scalar_lea.hbm %s411_s2, 16 }
  0x48   :  { %p275_p2 = scmp.ne.s32.totalorder %s411_s2, %s274_s28  ;;  %p278_p3 = scmp.lt.u32.totalorder %s274_s28, %s411_s2 }
  0x4a   :  { %p280_p4 = pnand %p278_p3, %p275_p2 }
  0x4c   :  { %283 = shalt.err (!%p280_p4)
}
  0x4d   :  { %200 = dma.vmem_to_hbm [thread:$0]  %s198_s23, 16, %s411_s2, [#allocation4]  }
  0x4e   :  { %288 = dma.done.wait [#allocation4], 16  }
  0x4f   :  { %289 = vsyncadd [#allocation4], 4294967280 }
  0x50   :  { %204 = vsyncpa [#allocation3], 1 }
  0x51   :  { %205 = vsyncpa [#allocation4], 1 }
  0x52   :  { %206 = vsyncpa [#allocation5], 1 }

</bundles_post_ra>
